<compile_context>
chip_gen: v6e
topology: v6e:2x2x1
jax: 0.10.0
libtpu: 0.0.40
codegen_flags: <defaults>
</compile_context>

<pallas_src>
import functools

import jax
import jax.numpy as jnp
from jax.experimental import pallas as pl
from jax.experimental.pallas import tpu as pltpu


def _round_up(x, m):
    return ((x + m - 1) // m) * m


# ----------------------------------------------------------------------------
# Pallas kernels
# ----------------------------------------------------------------------------

def _mm_kernel(*refs, act, has_res):
    """Tiled matmul with f32 VMEM scratch accumulation over the k grid axis.

    refs = (a, b, bias[, residual], out, acc); a/b/residual bf16, bias f32.
    Last-k epilogue: y = acc + bias (+ residual); activation; cast; store (bf16/f32).
    """
    if has_res:
        a_ref, b_ref, c_ref, r_ref, o_ref, acc_ref = refs
    else:
        a_ref, b_ref, c_ref, o_ref, acc_ref = refs
        r_ref = None

    k = pl.program_id(2)
    prod = jnp.dot(a_ref[...], b_ref[...], preferred_element_type=jnp.float32)

    @pl.when(k == 0)
    def _():
        acc_ref[...] = prod           # direct store: no zero-fill + add round trip

    @pl.when(k > 0)
    def _():
        acc_ref[...] += prod

    @pl.when(k == pl.num_programs(2) - 1)
    def _():
        y = acc_ref[...] + c_ref[...]
        if r_ref is not None:
            y = y + r_ref[...].astype(jnp.float32)
        if act == "relu":
            y = jnp.maximum(y, 0.0)
        elif act == "sigmoid":
            # stable sigmoid via tanh -> EUP slot, no overflow for large |y|
            y = 0.5 * (jnp.tanh(0.5 * y) + 1.0)
        o_ref[...] = y.astype(o_ref.dtype)


def _conv3x3_kernel(x_ref, w_ref, b_ref, o_ref, *, L, offsets):
    """Fused 3x3 stride-1 conv on a flattened padded image (no HBM im2col).

    x_ref: (1, Hp*Wp, C) bf16 ; w_ref: (9, C, tn) bf16 (BN scale folded in)
    b_ref: (1, tn) f32        ; o_ref: (1, L, tn) bf16 with L = Hout*Wp
    The 9 taps are contiguous row-shifted slices of the same VMEM block; junk
    (wrap-around) columns are stripped by the caller.
    """
    acc = jnp.dot(x_ref[0, offsets[0]:offsets[0] + L, :], w_ref[0],
                  preferred_element_type=jnp.float32)
    for t in range(1, 9):
        off = offsets[t]
        acc = acc + jnp.dot(x_ref[0, off:off + L, :], w_ref[t],
                            preferred_element_type=jnp.float32)
    y = jnp.maximum(acc + b_ref[...], 0.0)
    o_ref[0] = y.astype(o_ref.dtype)


def _max_windows_kernel(*refs):
    """Running elementwise max over k*k shifted-window inputs (all same tile)."""
    o_ref = refs[-1]
    acc = refs[0][...]
    for r in refs[1:-1]:
        acc = jnp.maximum(acc, r[...])
    o_ref[...] = acc


# ----------------------------------------------------------------------------
# Wrappers
# ----------------------------------------------------------------------------

def _pad2d(x, rows, cols):
    pr, pc = rows - x.shape[0], cols - x.shape[1]
    if pr == 0 and pc == 0:
        return x
    return jnp.pad(x, ((0, pr), (0, pc)))


def matmul_bias_act(a, b, bias, residual=None, act="none", out_dtype=jnp.bfloat16):
    """act((a @ b) + bias [+ residual]); bf16 MXU operands, f32 scratch accumulate."""
    M, K = a.shape
    K2, N = b.shape
    assert K == K2

    # adaptive tiles --------------------------------------------------------
    Mp8 = _round_up(M, 8)
    tm = min(256, Mp8)
    Mp = _round_up(M, tm)

    Np = _round_up(N, 128)
    tn = 256 if Np % 256 == 0 else 128
    if Mp // tm == 1 and tn == 256:
        tn = 128                      # >=2 column blocks so both v7x cores get work

    Kp = _round_up(K, 128)
    tk = next(t for t in (1024, 768, 640, 512, 384, 256, 128) if Kp % t == 0)

    a_p = _pad2d(a.astype(jnp.bfloat16), Mp, Kp)
    b_p = _pad2d(b.astype(jnp.bfloat16), Kp, Np)
    c_p = _pad2d(bias.reshape(1, N).astype(jnp.float32), 1, Np)

    in_specs = [
        pl.BlockSpec((tm, tk), lambda i, j, k: (i, k)),
        pl.BlockSpec((tk, tn), lambda i, j, k: (k, j)),
        pl.BlockSpec((1, tn), lambda i, j, k: (0, j)),
    ]
    operands = [a_p, b_p, c_p]
    has_res = residual is not None
    if has_res:
        operands.append(_pad2d(residual.astype(jnp.bfloat16), Mp, Np))
        in_specs.append(pl.BlockSpec((tm, tn), lambda i, j, k: (i, j)))

    # TODO(synk): pl.Buffered(3) on the weight spec would hide exposed weight DMA on
    # 2-3 step k grids (small single-digit-% win); skipped to keep lowering surface minimal.
    kernel = functools.partial(_mm_kernel, act=act, has_res=has_res)
    out = pl.pallas_call(
        kernel,
        out_shape=jax.ShapeDtypeStruct((Mp, Np), out_dtype),
        grid_spec=pltpu.PrefetchScalarGridSpec(
            num_scalar_prefetch=0,
            grid=(Mp // tm, Np // tn, Kp // tk),
            in_specs=in_specs,
            out_specs=pl.BlockSpec((tm, tn), lambda i, j, k: (i, j)),
            scratch_shapes=[pltpu.VMEM((tm, tn), jnp.float32)],
        ),
        compiler_params=pltpu.CompilerParams(
            dimension_semantics=("parallel", "parallel", "arbitrary"),
            vmem_limit_bytes=32 * 1024 * 1024),
    )(*operands)
    return out[:M, :N]


def _conv3x3_s1(x, wf, bias):
    """Fused 3x3 / stride-1 / pad-1 conv + folded-BN bias + ReLU, no HBM im2col.

    x: (N, H, W, C) bf16; wf: (O, C, 3, 3) f32 with BN scale already folded in.
    Works on the flattened padded image: the 9 taps become contiguous row-shifted
    slices of one VMEM block, so HBM activation traffic is one padded read and one
    (slightly wider) write.
    """
    N, H, W, C = x.shape
    O = wf.shape[0]
    Hout, Wout = H, W
    Wp = W + 2
    Hp = H + 3            # one extra zero row keeps every tap's row-slice in bounds
    xp = jnp.pad(x, ((0, 0), (1, 2), (1, 1), (0, 0)))
    xf = xp.reshape(N, Hp * Wp, C)

    wk = jnp.transpose(wf, (2, 3, 1, 0)).reshape(9, C, O).astype(jnp.bfloat16)
    b2 = bias.reshape(1, O).astype(jnp.float32)

    L = Hout * Wp
    tn = 128 if O % 128 == 0 else O
    J = O // tn
    offsets = tuple(dy * Wp + dx for dy in range(3) for dx in range(3))

    kernel = functools.partial(_conv3x3_kernel, L=L, offsets=offsets)
    out = pl.pallas_call(
        kernel,
        out_shape=jax.ShapeDtypeStruct((N, L, O), jnp.bfloat16),
        grid_spec=pltpu.PrefetchScalarGridSpec(
            num_scalar_prefetch=0,
            grid=(J, N),                       # weights stay resident across the batch axis
            in_specs=[pl.BlockSpec((1, Hp * Wp, C), lambda j, n: (n, 0, 0)),
                      pl.BlockSpec((9, C, tn), lambda j, n: (0, 0, j)),
                      pl.BlockSpec((1, tn), lambda j, n: (0, j))],
            out_specs=pl.BlockSpec((1, L, tn), lambda j, n: (n, 0, j)),
        ),
        compiler_params=pltpu.CompilerParams(
            dimension_semantics=("parallel", "parallel"),
            vmem_limit_bytes=32 * 1024 * 1024),
    )(xf, wk, b2)
    # strip the Wp-wide junk (wrap-around) columns of the flattened image
    return out.reshape(N, Hout, Wp, O)[:, :, :Wout, :]


def conv2d_bn_act(x, w, scale, bias, stride=1, padding=0, act="relu", residual=None):
    """x: NHWC; w: PyTorch OIHW; eval-mode BN folded: scale into weights, bias in epilogue."""
    N, H, W, C = x.shape
    O, I, kh, kw = w.shape
    assert I == C
    Hout = (H + 2 * padding - kh) // stride + 1
    Wout = (W + 2 * padding - kw) // stride + 1
    M = N * Hout * Wout

    wf = w.astype(jnp.float32) * scale.astype(jnp.float32)[:, None, None, None]
    xb = x.astype(jnp.bfloat16)     # no-op for inter-layer bf16 activations

    if kh == 3 and kw == 3 and stride == 1 and padding == 1 \
            and act == "relu" and residual is None:
        return _conv3x3_s1(xb, wf, bias)

    if kh == 1 and kw == 1 and padding == 0:
        xs = xb[:, ::stride, ::stride, :] if stride > 1 else xb
        a = xs.reshape(M, C)
    else:
        # TODO(synk): only the three stride-2 3x3 convs and the 7x7 stem still take the
        # materialized-im2col path (tiny tensors); stride-1 3x3 convs use the fused kernel.
        xp = jnp.pad(xb, ((0, 0), (padding, padding), (padding, padding), (0, 0)))
        cols = []
        for dy in range(kh):
            for dx in range(kw):
                sl = xp[:, dy:dy + stride * (Hout - 1) + 1:stride,
                        dx:dx + stride * (Wout - 1) + 1:stride, :]
                cols.append(sl)
        a = jnp.concatenate(cols, axis=-1).reshape(M, kh * kw * C)

    # weight: OIHW (scale folded) -> (kh, kw, I, O) -> [kh*kw*I, O]
    wk = jnp.transpose(wf, (2, 3, 1, 0)).reshape(kh * kw * I, O).astype(jnp.bfloat16)
    res2d = residual.reshape(M, O) if residual is not None else None
    y = matmul_bias_act(a, wk, bias, residual=res2d, act=act, out_dtype=jnp.bfloat16)
    return y.reshape(N, Hout, Wout, O)


def maxpool2d(x, kernel=3, stride=2, padding=1):
    N, H, W, C = x.shape
    xp = jnp.pad(x, ((0, 0), (padding, padding), (padding, padding), (0, 0)),
                 constant_values=-jnp.inf)
    Hout = (H + 2 * padding - kernel) // stride + 1
    Wout = (W + 2 * padding - kernel) // stride + 1
    M = N * Hout * Wout

    # 9 shifted strided views as separate inputs (bf16: half the traffic of before)
    slices = []
    for dy in range(kernel):
        for dx in range(kernel):
            sl = xp[:, dy:dy + stride * (Hout - 1) + 1:stride,
                    dx:dx + stride * (Wout - 1) + 1:stride, :]
            slices.append(sl.reshape(M, C))

    # lane-densify: present a 128-wide last dim (C is 64 after conv1)
    if (M * C) % 128 == 0:
        rows, lanes = (M * C) // 128, 128
    else:
        rows, lanes = M, C
    slices = [s.reshape(rows, lanes) for s in slices]

    tr = min(512, _round_up(rows, 8))
    if _round_up(rows, tr) // tr < 2 and tr >= 16:
        tr = _round_up(tr // 2, 8)      # >=2 row blocks so both v7x cores get work
    rows_p = _round_up(rows, tr)
    if rows_p != rows:
        slices = [jnp.pad(s, ((0, rows_p - rows), (0, 0))) for s in slices]

    nwin = kernel * kernel
    out = pl.pallas_call(
        _max_windows_kernel,
        out_shape=jax.ShapeDtypeStruct((rows_p, lanes), x.dtype),
        grid_spec=pltpu.PrefetchScalarGridSpec(
            num_scalar_prefetch=0,
            grid=(rows_p // tr,),
            in_specs=[pl.BlockSpec((tr, lanes), lambda i: (i, 0))] * nwin,
            out_specs=pl.BlockSpec((tr, lanes), lambda i: (i, 0)),
        ),
        compiler_params=pltpu.CompilerParams(
            dimension_semantics=("parallel",),
            vmem_limit_bytes=32 * 1024 * 1024),
    )(*slices)
    return out[:rows].reshape(M, C).reshape(N, Hout, Wout, C)


# ----------------------------------------------------------------------------
# ResNet-50 structure (synthetic deterministic parameters)
# ----------------------------------------------------------------------------

class ParamGen:
    def __init__(self, key):
        self.key = key
        self.count = 0

    def _n(self, shape):
        self.count += 1
        return jax.random.normal(jax.random.fold_in(self.key, self.count),
                                 shape, jnp.float32)

    def conv(self, shape):  # OIHW, He init (scaled down to keep depth-50 activations sane)
        O, I, kh, kw = shape
        std = 0.5 * (2.0 / (I * kh * kw)) ** 0.5
        return std * self._n(shape)

    def bn(self, c, eps=1e-5):  # eval-mode BN folded into per-channel scale/bias
        gamma = 1.0 + 0.1 * self._n((c,))
        beta = 0.1 * self._n((c,))
        mean = 0.1 * self._n((c,))
        var = 1.0 + 0.1 * jnp.abs(self._n((c,)))
        scale = gamma / jnp.sqrt(var + eps)
        return scale, beta - mean * scale

    def linear(self, in_f, out_f):  # returns W [in_f, out_f], b [out_f]
        std = (1.0 / in_f) ** 0.5
        return std * self._n((in_f, out_f)), std * self._n((out_f,))


def make_params(pg, input_hw):
    params = {"conv1_w": pg.conv((64, 3, 7, 7))}
    params["bn1_s"], params["bn1_b"] = pg.bn(64)

    layers_cfg = [(64, 3, 1), (128, 4, 2), (256, 6, 2), (512, 3, 2)]
    in_c = 64
    layers = []
    for width, blocks, stride in layers_cfg:
        blk_list = []
        for b in range(blocks):
            p = {"stride": stride if b == 0 else 1, "downsample": (b == 0)}
            p["conv1_w"] = pg.conv((width, in_c, 1, 1))
            p["bn1_s"], p["bn1_b"] = pg.bn(width)
            p["conv2_w"] = pg.conv((width, width, 3, 3))
            p["bn2_s"], p["bn2_b"] = pg.bn(width)
            p["conv3_w"] = pg.conv((width * 4, width, 1, 1))
            p["bn3_s"], p["bn3_b"] = pg.bn(width * 4)
            if p["downsample"]:
                p["ds_w"] = pg.conv((width * 4, in_c, 1, 1))
                p["ds_s"], p["ds_b"] = pg.bn(width * 4)
            blk_list.append(p)
            in_c = width * 4
        layers.append(blk_list)
    params["layers"] = layers

    H, W = input_hw
    feat_dim = 2048 * (H // 32) * (W // 32)  # what nn.LazyLinear would infer
    params["fc1_w"], params["fc1_b"] = pg.linear(feat_dim, 512)
    params["fc2_w"], params["fc2_b"] = pg.linear(512, 1)
    return params


def bottleneck(x, p):
    identity = x
    out = conv2d_bn_act(x, p["conv1_w"], p["bn1_s"], p["bn1_b"], 1, 0, "relu")
    out = conv2d_bn_act(out, p["conv2_w"], p["bn2_s"], p["bn2_b"], p["stride"], 1, "relu")
    if p["downsample"]:
        identity = conv2d_bn_act(x, p["ds_w"], p["ds_s"], p["ds_b"], p["stride"], 0, "none")
    # residual add + ReLU fused into the conv3 matmul epilogue (bf16 residual)
    out = conv2d_bn_act(out, p["conv3_w"], p["bn3_s"], p["bn3_b"], 1, 0, "relu",
                        residual=identity)
    return out


def net_forward(x_nchw, params):
    # layout: input NCHW (PyTorch convention) -> NHWC internally, bf16 between layers
    x = jnp.transpose(x_nchw.astype(jnp.float32), (0, 2, 3, 1))
    x = conv2d_bn_act(x, params["conv1_w"], params["bn1_s"], params["bn1_b"],
                      stride=2, padding=3, act="relu")
    x = maxpool2d(x, 3, 2, 1)
    for blk_list in params["layers"]:
        for p in blk_list:
            x = bottleneck(x, p)

    # nn.Flatten on NCHW flattens (C, H, W) order -> transpose back before flattening
    N, H, W, C = x.shape
    feat = jnp.transpose(x, (0, 3, 1, 2)).reshape(N, C * H * W)
    h = matmul_bias_act(feat, params["fc1_w"], params["fc1_b"], act="none",
                        out_dtype=jnp.float32)
    out = matmul_bias_act(h, params["fc2_w"], params["fc2_b"], act="sigmoid",
                          out_dtype=jnp.float32)
    return out  # [N, 1] in [0, 1]


# ----------------------------------------------------------------------------

if __name__ == "__main__":
    key = jax.random.PRNGKey(0)
    # TODO(synk): pretrained torchvision ResNet50 weights are replaced by deterministic
    # synthetic init (no checkpoint loading in this environment).
    pg = ParamGen(key)
    H = W = 64                                   # must be a multiple of 32 for the backbone
    params = make_params(pg, (H, W))
    x = jax.random.normal(jax.random.fold_in(key, 999_999), (2, 3, H, W), jnp.float32)

    out = net_forward(x, params)
    out = jax.block_until_ready(out)
    assert out.shape == (2, 1)
    assert bool(jnp.all(jnp.isfinite(out)))
    assert bool(jnp.all((out >= 0.0) & (out <= 1.0)))
    print("KERNEL_OK")
</pallas_src>

<mosaic_0001>
module attributes {stable_mosaic.version = 11 : i64} {
  func.func @_mm_kernel(%arg0: i32, %arg1: i32, %arg2: i32, %arg3: memref<256x256xbf16, #tpu.memory_space<vmem>>, %arg4: memref<256x128xbf16, #tpu.memory_space<vmem>>, %arg5: memref<1x128xf32, #tpu.memory_space<vmem>>, %arg6: memref<256x128xbf16, #tpu.memory_space<vmem>>, %arg7: memref<256x128xf32, #tpu.memory_space<vmem>>) attributes {dimension_semantics = [#tpu.dimension_semantics<parallel>, #tpu.dimension_semantics<parallel>, #tpu.dimension_semantics<arbitrary>], iteration_bounds = array<i64: 8, 1, 1>, scalar_prefetch = 0 : i64, scratch_operands = 1 : i64, tpu.core_type = #tpu.core_type<tc>, window_params = [{transform_indices = @transform_0, window_bounds = array<i64: 256, 256>}, {transform_indices = @transform_1, window_bounds = array<i64: 256, 128>}, {transform_indices = @transform_2, window_bounds = array<i64: 1, 128>}, {transform_indices = @transform_3, window_bounds = array<i64: 256, 128>}]} {
    %c0 = arith.constant 0 : index
    %c0_0 = arith.constant 0 : index
    %0 = vector.load %arg3[%c0, %c0_0] : memref<256x256xbf16, #tpu.memory_space<vmem>>, vector<256x256xbf16>
    %c0_1 = arith.constant 0 : index
    %c0_2 = arith.constant 0 : index
    %1 = vector.load %arg4[%c0_1, %c0_2] : memref<256x128xbf16, #tpu.memory_space<vmem>>, vector<256x128xbf16>
    %cst = arith.constant dense<0.000000e+00> : vector<256x128xf32>
    %2 = tpu.matmul %0, %1, %cst {dimension_numbers = #tpu.dot_dimension_numbers<[1], [0], [0], [1], [0, 0, 1, 1], [], []>} : vector<256x256xbf16>, vector<256x128xbf16>, vector<256x128xf32> -> vector<256x128xf32>
    %c0_i32 = arith.constant 0 : i32
    %3 = arith.cmpi eq, %arg2, %c0_i32 : i32
    %4 = arith.extui %3 : i1 to i32
    %c0_i32_3 = arith.constant 0 : i32
    %5 = arith.cmpi ne, %4, %c0_i32_3 : i32
    scf.if %5 {
      %c0_8 = arith.constant 0 : index
      %c0_9 = arith.constant 0 : index
      %12 = vector.load %arg7[%c0_8, %c0_9] : memref<256x128xf32, #tpu.memory_space<vmem>>, vector<256x128xf32>
      tpu.vector_store %arg7[%c0_8, %c0_9], %2 {strides = array<i32>} : memref<256x128xf32, #tpu.memory_space<vmem>>, vector<256x128xf32>,
    } else {
    }
    %c0_i32_4 = arith.constant 0 : i32
    %6 = arith.cmpi sgt, %arg2, %c0_i32_4 : i32
    %7 = arith.extui %6 : i1 to i32
    %c0_i32_5 = arith.constant 0 : i32
    %8 = arith.cmpi ne, %7, %c0_i32_5 : i32
    scf.if %8 {
      %c0_8 = arith.constant 0 : index
      %c0_9 = arith.constant 0 : index
      %12 = vector.load %arg7[%c0_8, %c0_9] : memref<256x128xf32, #tpu.memory_space<vmem>>, vector<256x128xf32>
      %13 = arith.addf %12, %2 : vector<256x128xf32>
      %c0_10 = arith.constant 0 : index
      %c0_11 = arith.constant 0 : index
      %14 = vector.load %arg7[%c0_10, %c0_11] : memref<256x128xf32, #tpu.memory_space<vmem>>, vector<256x128xf32>
      tpu.vector_store %arg7[%c0_10, %c0_11], %13 {strides = array<i32>} : memref<256x128xf32, #tpu.memory_space<vmem>>, vector<256x128xf32>,
    } else {
    }
    %c0_i32_6 = arith.constant 0 : i32
    %9 = arith.cmpi eq, %arg2, %c0_i32_6 : i32
    %10 = arith.extui %9 : i1 to i32
    %c0_i32_7 = arith.constant 0 : i32
    %11 = arith.cmpi ne, %10, %c0_i32_7 : i32
    scf.if %11 {
      %c0_8 = arith.constant 0 : index
      %c0_9 = arith.constant 0 : index
      %12 = vector.load %arg7[%c0_8, %c0_9] : memref<256x128xf32, #tpu.memory_space<vmem>>, vector<256x128xf32>
      %c0_10 = arith.constant 0 : index
      %c0_11 = arith.constant 0 : index
      %13 = vector.load %arg5[%c0_10, %c0_11] : memref<1x128xf32, #tpu.memory_space<vmem>>, vector<1x128xf32>
      %14 = vector.broadcast %13 : vector<1x128xf32> to vector<256x128xf32>
      %15 = arith.addf %12, %14 : vector<256x128xf32>
      %cst_12 = arith.constant 0.000000e+00 : f32
      %16 = vector.broadcast %cst_12 : f32 to vector<256x128xf32>
      %17 = arith.maximumf %15, %16 : vector<256x128xf32>
      %18 = arith.truncf %17 : vector<256x128xf32> to vector<256x128xbf16>
      %c0_13 = arith.constant 0 : index
      %c0_14 = arith.constant 0 : index
      %19 = vector.load %arg6[%c0_13, %c0_14] : memref<256x128xbf16, #tpu.memory_space<vmem>>, vector<256x128xbf16>
      tpu.vector_store %arg6[%c0_13, %c0_14], %18 {strides = array<i32>} : memref<256x128xbf16, #tpu.memory_space<vmem>>, vector<256x128xbf16>,
    } else {
    }
    return
  }
  func.func @transform_0(%arg0: i32, %arg1: i32, %arg2: i32) -> (i32, i32) {
    %c0_i32 = arith.constant 0 : i32
    return %arg0, %arg2 : i32, i32
  }
  func.func @transform_1(%arg0: i32, %arg1: i32, %arg2: i32) -> (i32, i32) {
    %c0_i32 = arith.constant 0 : i32
    return %arg2, %arg1 : i32, i32
  }
  func.func @transform_2(%arg0: i32, %arg1: i32, %arg2: i32) -> (i32, i32) {
    %c0_i32 = arith.constant 0 : i32
    %c0_i32_0 = arith.constant 0 : i32
    return %c0_i32, %arg1 : i32, i32
  }
  func.func @transform_3(%arg0: i32, %arg1: i32, %arg2: i32) -> (i32, i32) {
    %c0_i32 = arith.constant 0 : i32
    return %arg0, %arg1 : i32, i32
  }
}

</mosaic_0001>

<bundles_post_ra>
// kernel: tpu_custom_call.1
= control target key start
LH: loop header
LB: loop body
LE: loop exit
PB: predicated region body
PF: predicated region fallthrough
CT: control target
= control target key end

     0   :  { %8 = vsyncpa [#allocation4], 0  ;;  %s2213_s0 = inlined_call_operand.hbm [shape: bf16[2048,256], index: 0, kind: input, shape index: {}]   ;;  %s2214_s1 = inlined_call_operand.hbm [shape: bf16[256,128], index: 1, kind: input, shape index: {}]   ;;  %s2215_s2 = inlined_call_operand.vmem [shape: f32[1,128], index: 2, kind: input, shape index: {}]   ;;  %s2216_s3 = inlined_call_operand.hbm [shape: bf16[2048,128], index: 3, kind: output, shape index: {}]  }
   0x1   :  { %10 = vsyncpa [#allocation4 + $0x1], 0 }
   0x2   :  { %11 = vsyncpa [#allocation7], 0 }
   0x3   :  { %12 = vsyncpa [#allocation5], 0 }
   0x4   :  { %14 = vsyncpa [#allocation5 + $0x1], 0  ;;  %s1943_s12 = smov 0   ;;  %s1945_s13 = smov 0  }
   0x5   :  { %s1947_s14 = smov 0   ;;  %s1949_s15 = smov 0  }
   0x6   :  { %s1951_s16 = smov 0   ;;  %s1953_s17 = smov 0  }
   0x7 LB: > { %s1273_s18 = sadd.s32 4294967295, %s1912_s17   ;;  %s1274_s19 = sadd.s32 4294967294, %s1912_s17   ;;  %s1912_s17 = sphi %s1953_s17, %s20_s17   ;;  %s1908_s16 = sphi %s1951_s16, %s2233_s16   ;;  %s1904_s15 = sphi %s1949_s15, %s2232_s15   ;;  %s1900_s14 = sphi %s1947_s14, %s2231_s14   ;;  %s1896_s13 = sphi %s1945_s13, %s2230_s13   ;;  %s1892_s12 = sphi %s1943_s12, %s2229_s12  }
   0x8   : > { %p61_p0 = scmp.ne.s32.totalorder %s1896_s13, %s1892_s12  ;;  %p1977_p1 = scmp.eq.s32.totalorder %s1273_s18, 0 }
   0x9   : > { %p1981_p2 = scmp.eq.s32.totalorder %s1273_s18, 7  ;;  %p147_p3 = scmp.eq.s32.totalorder %s1274_s19, 7 }
   0xa   : > { %p1987_p4 = por %p1977_p1, %p61_p0  ;;  %p1275_p5 = scmp.ge.s32.totalorder %s1912_s17, 1 }
   0xb   : > { %p1992_p6 = por %p147_p3, %p61_p0  ;;  %p154_p7 = scmp.lt.s32.totalorder %s1912_s17, 9 }
   0xc   : > { %s1914_s25 = smov [#allocation6]   ;;  %s39_s28 = sadd.s32 1, %s1908_s16 }
   0xd   : > { %s2221_s23 = scalar_select %p1992_p6, 1, 0 }
   0xe   : > { %p1997_p8 = pnand %p1275_p5, %p154_p7  ;;  %s170_s26 = sshll.u32 %s1914_s25, 4  ;;  %s171_s26 = int_to_ptr.vmem [resolvable:$true] %s170_s26 }
   0xf   : > { %s1785_s29 = scalar_lea.vmem %s171_s26, 2048  ;;  %p1793_p3 = scmp.lt.s32.totalorder %s171_s26, %s171_s26 }
  0x10   : > { %p1639_p9 = pneg %p1997_p8  ;;  %p1786_p12 = scmp.ne.s32.totalorder %s171_s26, %s1785_s29 }
  0x11   : > { %p1794_p5 = scmp.lt.s32.totalorder %s1785_s29, %s1785_s29 }
  0x12   : > { %p2005_p10 = pnand %p1639_p9, %p1977_p1 }
  0x13   : > { %p1795_p7 = por %p1794_p5, %p1793_p3 }
  0x14   : > { %p1776_p11 = pneg %p2005_p10 }
  0x16   : > { %p1788_p13 = pnand %p1786_p12, %p1776_p11 }
  0x18   : > { %p1789_p0 = pneg %p1788_p13 }
  0x1a   : > { %p1796_p6 = pnand %p1795_p7, %p1789_p0 }
  0x1c   : > { %1799 = shalt.err (!%p1796_p6)
}
  0x1d   : > { %s1915_s30 = smov 64   ;;  %s1916_s4 = smov 4  }
  0x1e   : > { %1642 = dma.hbm_to_vmem [thread:$0]  (!%p2005_p10), %s2214_s1, 2048, %s171_s26, [#allocation7], %s1915_s30, %s1915_s30, %s1916_s4  }
  0x1f   : > { %p41_p9 = scmp.ge.s32.totalorder %s39_s28, 8  ;;  %s48_s7 = sadd.s32 1, %s1900_s14 }
  0x20   : > { %p55_p6 = scmp.ne.s32.totalorder %s1900_s14, %s1896_s13  ;;  %p56_p11 = scmp.eq.s32.totalorder %s1912_s17, 0 }
  0x21   : > { %s2235_s28 = smov (%p41_p9, %s39_s28), 0  ;;  %p1652_p0 = scmp.lt.s32.totalorder %s1912_s17, 8 }
  0x22   : > { %p2023_p12 = por %p56_p11, %p55_p6  ;;  %p2029_p13 = por %p1981_p2, %p55_p6 }
  0x23   : > { %s43_s10 = ssub.s32 %s1908_s16, %s2235_s28  ;;  %s190_s11 = sand.u32 1, %s1900_s14  }
  0x24   : > { %s2225_s9 = scalar_select %p2029_p13, 1, 0 }
  0x25   : > { %p46_p10 = scmp.eq.s32.totalorder %s43_s10, 0  ;;  %s1279_s18 = sshll.u32 %s190_s11, 8 }
  0x26   : > { %s1374_s25 = sshll.u32 %s1908_s16, 12  ;;  %s194_s30 = scalar_lea.vmem [#allocation3], %s1279_s18 }
  0x27   : > { %s2038_s19 = scalar_select %p46_p10, %s1900_s14, %s48_s7  }
  0x28   : > { %s203_s29 = scalar_lea.hbm %s2213_s0, %s1374_s25  ;;  %s204_s4 = sshll.u32 %s194_s30, 4  ;;  %s205_s4 = int_to_ptr.vmem [resolvable:$true] %s204_s4 }
  0x29   : > { %p2046_p2 = pnand %p1652_p0, %p2023_p12  ;;  %s191_s5 = scalar_lea.sflag [#allocation4], %s190_s11 }
  0x2a   : > { %s1813_s6 = scalar_lea.vmem %s205_s4, 4096  ;;  %s1917_s7 = smov [#allocation3]  }
  0x2b   : > { %p1802_p3 = pneg %p2046_p2  ;;  %p1814_p5 = scmp.ne.s32.totalorder %s205_s4, %s1813_s6 }
  0x2c   : > { %s1818_s10 = sshll.u32 %s1917_s7, 4  ;;  %s1819_s10 = int_to_ptr.vmem [resolvable:$false] %s1818_s10 }
  0x2d   : > { %p1816_p7 = pnand %p1814_p5, %p1802_p3  ;;  %s1820_s25 = scalar_lea.vmem %s1819_s10, 8192 }
  0x2e   : > { %p1821_p6 = scmp.lt.s32.totalorder %s205_s4, %s1819_s10  ;;  %p1822_p11 = scmp.lt.s32.totalorder %s1820_s25, %s1813_s6 }
  0x2f   : > { %p1817_p9 = pneg %p1816_p7 }
  0x30   : > { %p1823_p10 = por %p1822_p11, %p1821_p6 }
  0x32   : > { %p1824_p13 = pnand %p1823_p10, %p1817_p9 }
  0x34   : > { %1827 = shalt.err (!%p1824_p13)
}
  0x35   : > { %s1918_s8 = smov 128   ;;  %s1919_s18 = smov 8  }
  0x36   : > { %1646 = dma.hbm_to_vmem [thread:$0]  (!%p2046_p2), %s203_s29, 4096, %s205_s4, %s191_s5, %s1918_s8, %s1918_s8, %s1919_s18  }
  0x37   : > { %216 = sbr.rel (%p1997_p8) target bundleno = 373 (0x175), region = 32  ;;  %s2057_s11 = sand.u32 (!%p1997_p8), 1, %s1896_s13  }
  0x38   : > { %s1284_s26 = sshll.u32 (!%p1997_p8), %s2057_s11, 8  ;;  %s219_s27 = scalar_lea.sflag (!%p1997_p8), [#allocation4], %s2057_s11 }
  0x39   : > { %s2061_s30 = scalar_lea.vmem (!%p1997_p8), [#allocation3], %s1284_s26 }
  0x3c   : > { %1879 = dma.done.wait (%p1987_p4), %s219_s27, 4096  }
  0x3d   : > { %1881 = vsyncadd (%p1987_p4), %s219_s27, 4294963200 }
  0x3e   : > { %1883 = dma.done.wait (%p1977_p1), [#allocation7], 2048  }
  0x3f   : > { %1885 = vsyncadd (%p1977_p1), [#allocation7], 4294965248  ;;  %v1710_v0 = vld [vmem:[#allocation6 + $0x78] sm:$0xff]   ;;  %v1712_v2 = vld [vmem:[#allocation6 + $0x70] sm:$0xff]   ;;  %s1286_s24 = sshll.u32 %s2057_s11, 7  ;;  %s1407_s4 = sshll.u32 %s1904_s15, 11 }
  0x40   : > { %v1711_v1 = vld [vmem:[#allocation6 + $0x38] sm:$0xff]   ;;  %1503 = vmatprep.subr.bf16.mxu0 %v1710_v0  ;;  %1615 = vmatprep.subr.bf16.mxu1 %v1710_v0  ;;  %v1713_v3 = vld [vmem:[#allocation6 + $0x30] sm:$0xff]   ;;  %v1714_v4 = vld [vmem:[#allocation6 + $0x68] sm:$0xff]   ;;  %s2115_s29 = scalar_lea.vmem [#allocation8], %s1286_s24  ;;  %s2162_s7 = scalar_lea.hbm %s2216_s3, %s1407_s4 }
  0x41   : > { %1504 = vmatpush3.bf16.msra.mxu0 %v1711_v1  ;;  %1623 = vmatpush3.bf16.msra.mxu1 %v1711_v1  ;;  %v1715_v5 = vld [vmem:[#allocation6 + $0x28] sm:$0xff]   ;;  %v1716_v6 = vld [vmem:[#allocation6 + $0x60] sm:$0xff]   ;;  %v1718_v8 = vld [vmem:[#allocation6 + $0x58] sm:$0xff]   ;;  %s1158_s21 = sshll.u32 %s2115_s29, 4  ;;  %s1144_s15 = scalar_lea.sflag [#allocation5], %s2057_s11  ;;  %s2164_s21 = int_to_ptr.vmem [resolvable:$true] %s1158_s21 }
  0x42   : > { %1505 = vmatprep.subr.bf16.mxu0 %v1712_v2  ;;  %1616 = vmatprep.subr.bf16.mxu1 %v1712_v2  ;;  %v1717_v7 = vld [vmem:[#allocation6 + $0x20] sm:$0xff]   ;;  %v1719_v9 = vld [vmem:[#allocation6 + $0x18] sm:$0xff]   ;;  %v1720_v10 = vld [vmem:[#allocation6 + $0x50] sm:$0xff]   ;;  %s1828_s10 = scalar_lea.vmem %s2164_s21, 2048  ;;  %p2227_p4 = scmp.ne.s32.totalorder %s2225_s9, 0 }
  0x43   : > { %v1728_v11 = vld [vmem:[%s2061_s30 + $0x4] ss:$8 sps:$4 sm:$0xff]   ;;  %v1721_v13 = vld [vmem:[#allocation6 + $0x10] sm:$0xff]   ;;  %v1726_v18 = vld [vmem:[%s2061_s30] ss:$8 sps:$4 sm:$0xff]   ;;  %p1829_p1 = scmp.ne.s32.totalorder %s2164_s21, %s1828_s10  ;;  %s1920_s25 = smov [#allocation8]  }
  0x44   : > { %v1731_v12 = vld [vmem:[%s2061_s30 + $0x84] ss:$8 sps:$4 sm:$0xff]   ;;  %612 = vmatprep.mubr.bf16.mxu0 %v1728_v11  ;;  %v1729_v19 = vld [vmem:[%s2061_s30 + $0x80] ss:$8 sps:$4 sm:$0xff]   ;;  %v1732_v20 = vld [vmem:[%s2061_s30 + $0x14] ss:$8 sps:$4 sm:$0xff]  }
  0x45   : > { %1506 = vmatpush3.bf16.msra.mxu0 %v1713_v3  ;;  %1624 = vmatpush3.bf16.msra.mxu1 %v1713_v3  ;;  %v1722_v14 = vld [vmem:[#allocation6 + $0x48] sm:$0xff]   ;;  %v1724_v16 = vld [vmem:[#allocation6 + $0x40] sm:$0xff]   ;;  %v1734_v21 = vld [vmem:[%s2061_s30 + $0x94] ss:$8 sps:$4 sm:$0xff]   ;;  %p1830_p8 = pnand %p1829_p1, %p2227_p4  ;;  %s1832_s8 = sshll.u32 %s1920_s25, 4  ;;  %s1833_s8 = int_to_ptr.vmem [resolvable:$false] %s1832_s8 }
  0x46   : > { %1507 = vmatprep.subr.bf16.mxu0 %v1714_v4  ;;  %1617 = vmatprep.subr.bf16.mxu1 %v1714_v4  ;;  %v1723_v15 = vld [vmem:[#allocation6 + $0x8] sm:$0xff]   ;;  %v1725_v17 = vld [vmem:[#allocation6] sm:$0xff]   ;;  %v1736_v22 = vld [vmem:[%s2061_s30 + $0x10] ss:$8 sps:$4 sm:$0xff]   ;;  %s1834_s18 = scalar_lea.vmem %s1833_s8, 4096  ;;  %p1835_p13 = scmp.lt.s32.totalorder %s2164_s21, %s1833_s8 }
  0x47   : > { %676 = vmatprep.mubr.bf16.mxu1 %v1731_v12  ;;  %v1737_v23 = vld [vmem:[%s2061_s30 + $0x90] ss:$8 sps:$4 sm:$0xff]   ;;  %v1738_v24 = vld [vmem:[%s2061_s30 + $0x24] ss:$8 sps:$4 sm:$0xff]   ;;  %v1742_v26 = vld [vmem:[%s2061_s30 + $0x20] ss:$8 sps:$4 sm:$0xff]   ;;  %p1831_p12 = pneg %p1830_p8  ;;  %p1836_p0 = scmp.lt.s32.totalorder %s1834_s18, %s1828_s10 }
  0x48   : > { %v1740_v25 = vld [vmem:[%s2061_s30 + $0xa4] ss:$8 sps:$4 sm:$0xff]   ;;  %v1743_v27 = vld [vmem:[%s2061_s30 + $0xa0] ss:$8 sps:$4 sm:$0xff]   ;;  %v1744_v28 = vld [vmem:[%s2061_s30 + $0x34] ss:$8 sps:$4 sm:$0xff]  }
  0x49   : > { %1508 = vmatpush3.bf16.msra.mxu0 %v1715_v5  ;;  %1625 = vmatpush3.bf16.msra.mxu1 %v1715_v5  ;;  %v1746_v29 = vld [vmem:[%s2061_s30 + $0xb4] ss:$8 sps:$4 sm:$0xff]   ;;  %v1748_v30 = vld [vmem:[%s2061_s30 + $0x30] ss:$8 sps:$4 sm:$0xff]   ;;  %v1750_v32 = vld [vmem:[%s2061_s30 + $0x44] ss:$8 sps:$4 sm:$0xff]   ;;  %p1837_p2 = por %p1836_p0, %p1835_p13 }
  0x4a   : > { %1509 = vmatprep.subr.bf16.mxu0 %v1716_v6  ;;  %1618 = vmatprep.subr.bf16.mxu1 %v1716_v6  ;;  %v1749_v31 = vld [vmem:[%s2061_s30 + $0xb0] ss:$8 sps:$4 sm:$0xff]   ;;  %v1752_v33 = vld [vmem:[%s2061_s30 + $0xc4] ss:$8 sps:$4 sm:$0xff]   ;;  %v1754_v34 = vld [vmem:[%s2061_s30 + $0x40] ss:$8 sps:$4 sm:$0xff]  }
  0x4b   : > { %v1755_v35 = vld [vmem:[%s2061_s30 + $0xc0] ss:$8 sps:$4 sm:$0xff]   ;;  %v1756_v36 = vld [vmem:[%s2061_s30 + $0x54] ss:$8 sps:$4 sm:$0xff]   ;;  %v1760_v38 = vld [vmem:[%s2061_s30 + $0x50] ss:$8 sps:$4 sm:$0xff]   ;;  %p1838_p3 = pnand %p1837_p2, %p1831_p12 }
  0x4c   : > { %v1758_v37 = vld [vmem:[%s2061_s30 + $0xd4] ss:$8 sps:$4 sm:$0xff]   ;;  %v1761_v39 = vld [vmem:[%s2061_s30 + $0xd0] ss:$8 sps:$4 sm:$0xff]   ;;  %v1762_v40 = vld [vmem:[%s2061_s30 + $0x64] ss:$8 sps:$4 sm:$0xff]  }
  0x4d   : > { %1510 = vmatpush3.bf16.msra.mxu0 %v1717_v7  ;;  %1626 = vmatpush3.bf16.msra.mxu1 %v1717_v7  ;;  %v1764_v41 = vld [vmem:[%s2061_s30 + $0xe4] ss:$8 sps:$4 sm:$0xff]   ;;  %v1766_v42 = vld [vmem:[%s2061_s30 + $0x60] ss:$8 sps:$4 sm:$0xff]   ;;  %v1768_v44 = vld [vmem:[%s2061_s30 + $0x74] ss:$8 sps:$4 sm:$0xff]  }
  0x4e   : > { %1511 = vmatprep.subr.bf16.mxu0 %v1718_v8  ;;  %1619 = vmatprep.subr.bf16.mxu1 %v1718_v8  ;;  %v1767_v43 = vld [vmem:[%s2061_s30 + $0xe0] ss:$8 sps:$4 sm:$0xff]   ;;  %v1770_v45 = vld [vmem:[%s2061_s30 + $0xf4] ss:$8 sps:$4 sm:$0xff]   ;;  %v1772_v46 = vld [vmem:[%s2061_s30 + $0x70] ss:$8 sps:$4 sm:$0xff]  }
  0x4f   : > { %v1773_v47 = vld [vmem:[%s2061_s30 + $0xf0] ss:$8 sps:$4 sm:$0xff]   ;;  %v2106_v53 = vld [vmem:[%s2215_s2] ss:$0 sm:$0xff] }
  0x51   : > { %1512 = vmatpush3.bf16.msra.mxu0 %v1719_v9  ;;  %1627 = vmatpush3.bf16.msra.mxu1 %v1719_v9 }
  0x52   : > { %1513 = vmatprep.subr.bf16.mxu0 %v1720_v10  ;;  %1620 = vmatprep.subr.bf16.mxu1 %v1720_v10 }
  0x55   : > { %1514 = vmatpush3.bf16.msra.mxu0 %v1721_v13  ;;  %1628 = vmatpush3.bf16.msra.mxu1 %v1721_v13 }
  0x56   : > { %1515 = vmatprep.subr.bf16.mxu0 %v1722_v14  ;;  %1621 = vmatprep.subr.bf16.mxu1 %v1722_v14 }
  0x59   : > { %1516 = vmatpush3.bf16.msra.mxu0 %v1723_v15  ;;  %1629 = vmatpush3.bf16.msra.mxu1 %v1723_v15 }
  0x5a   : > { %1517 = vmatprep.subr.bf16.mxu0 %v1724_v16  ;;  %1622 = vmatprep.subr.bf16.mxu1 %v1724_v16 }
  0x5d   : > { %1518 = vmatpush3.bf16.msra.mxu0 %v1725_v17  ;;  %1630 = vmatpush3.bf16.msra.mxu1 %v1725_v17 }
  0x60   : > { %613 = vmatmul.mubr.bf16.vlgmr.msra.gmra.mxu0 %v1726_v18  ;;  %677 = vmatmul.mubr.bf16.vlgmr.msra.gmra.mxu1 %v1729_v19 }
  0x61   : > { %620 = vmatprep.mubr.bf16.mxu0 %v1732_v20  ;;  %684 = vmatprep.mubr.bf16.mxu1 %v1734_v21 }
  0x68   : > { %621 = vmatmul.mubr.bf16.gmra.mxu0 %v1736_v22  ;;  %685 = vmatmul.mubr.bf16.gmra.mxu1 %v1737_v23 }
  0x69   : > { %628 = vmatprep.mubr.bf16.mxu0 %v1738_v24  ;;  %692 = vmatprep.mubr.bf16.mxu1 %v1740_v25 }
  0x70   : > { %629 = vmatmul.mubr.bf16.gmra.mxu0 %v1742_v26  ;;  %693 = vmatmul.mubr.bf16.gmra.mxu1 %v1743_v27 }
  0x71   : > { %636 = vmatprep.mubr.bf16.mxu0 %v1744_v28  ;;  %700 = vmatprep.mubr.bf16.mxu1 %v1746_v29 }
  0x78   : > { %637 = vmatmul.mubr.bf16.gmra.mxu0 %v1748_v30  ;;  %701 = vmatmul.mubr.bf16.gmra.mxu1 %v1749_v31 }
  0x79   : > { %644 = vmatprep.mubr.bf16.mxu0 %v1750_v32  ;;  %708 = vmatprep.mubr.bf16.mxu1 %v1752_v33 }
  0x80   : > { %645 = vmatmul.mubr.bf16.gmra.mxu0 %v1754_v34  ;;  %709 = vmatmul.mubr.bf16.gmra.mxu1 %v1755_v35 }
  0x81   : > { %652 = vmatprep.mubr.bf16.mxu0 %v1756_v36  ;;  %716 = vmatprep.mubr.bf16.mxu1 %v1758_v37 }
  0x88   : > { %653 = vmatmul.mubr.bf16.gmra.mxu0 %v1760_v38  ;;  %717 = vmatmul.mubr.bf16.gmra.mxu1 %v1761_v39 }
  0x89   : > { %660 = vmatprep.mubr.bf16.mxu0 %v1762_v40  ;;  %724 = vmatprep.mubr.bf16.mxu1 %v1764_v41 }
  0x90   : > { %661 = vmatmul.mubr.bf16.gmra.mxu0 %v1766_v42  ;;  %725 = vmatmul.mubr.bf16.gmra.mxu1 %v1767_v43 }
  0x91   : > { %668 = vmatprep.mubr.bf16.mxu0 %v1768_v44  ;;  %732 = vmatprep.mubr.bf16.mxu1 %v1770_v45 }
  0x98   : > { %669 = vmatmul.mubr.bf16.gmra.mxu0 %v1772_v46  ;;  %733 = vmatmul.mubr.bf16.gmra.mxu1 %v1773_v47 }
 0x120   : > { %v1519_v48 = vpop.f32.mrf.mxu0  ;;  %v1567_v49 = vpop.f32.mrf.mxu1 }
 0x122   : > { %v1520_v50 = vpop.f32.mrf.mxu0  ;;  %v1568_v51 = vpop.f32.mrf.mxu1 }
 0x123   : > { %v1521_v52 = vadd.f32 %v1520_v50, %v1519_v48  ;;  %v1569_v54 = vadd.f32 %v1568_v51, %v1567_v49 }
 0x124   : > { %v1522_v55 = vpop.f32.mrf.mxu0  ;;  %v1570_v56 = vpop.f32.mrf.mxu1 }
 0x125   : > { %v919_v57 = vadd.f32 %v1521_v52, %v2106_v53  ;;  %v935_v58 = vadd.f32 %v1569_v54, %v2106_v53 }
 0x126   : > { %v1523_v59 = vpop.f32.mrf.mxu0  ;;  %v1571_v60 = vpop.f32.mrf.mxu1 }
 0x127   : > { %v1524_v61 = vadd.f32 %v1523_v59, %v1522_v55  ;;  %v1572_v62 = vadd.f32 %v1571_v60, %v1570_v56  ;;  %v951_v3 = vmax.f32 %v919_v57, 0.0  ;;  %v967_v4 = vmax.f32 %v935_v58, 0.0 }
 0x128   : > { %v1525_v63 = vpop.f32.mrf.mxu0  ;;  %v1573_v0 = vpop.f32.mrf.mxu1 }
 0x129   : > { %v920_v1 = vadd.f32 %v1524_v61, %v2106_v53  ;;  %v936_v2 = vadd.f32 %v1572_v62, %v2106_v53 }
 0x12a   : > { %v1526_v5 = vpop.f32.mrf.mxu0  ;;  %v1574_v6 = vpop.f32.mrf.mxu1 }
 0x12b   : > { %v952_v7 = vmax.f32 %v920_v1, 0.0  ;;  %v968_v8 = vmax.f32 %v936_v2, 0.0  ;;  %v1527_v9 = vadd.f32 %v1526_v5, %v1525_v63  ;;  %v1575_v10 = vadd.f32 %v1574_v6, %v1573_v0 }
 0x12c   : > { %v1528_v11 = vpop.f32.mrf.mxu0  ;;  %v1576_v12 = vpop.f32.mrf.mxu1 }
 0x12d   : > { %v1411_v13 = vpack.c.bf16 %v952_v7, %v951_v3  ;;  %v1451_v14 = vpack.c.bf16 %v968_v8, %v967_v4  ;;  %v921_v15 = vadd.f32 %v1527_v9, %v2106_v53  ;;  %v937_v16 = vadd.f32 %v1575_v10, %v2106_v53 }
 0x12e   : > { %v1529_v17 = vpop.f32.mrf.mxu0  ;;  %v1577_v18 = vpop.f32.mrf.mxu1 }
 0x12f   : > { %1412 = vst [vmem:[%s2115_s29] sm:$0xff] %v1411_v13   ;;  %1495 = vst [vmem:[%s2115_s29 + $0x40] sm:$0xff] %v1451_v14   ;;  %v1530_v19 = vadd.f32 %v1529_v17, %v1528_v11  ;;  %v1578_v20 = vadd.f32 %v1577_v18, %v1576_v12  ;;  %v953_v25 = vmax.f32 %v921_v15, 0.0  ;;  %v969_v26 = vmax.f32 %v937_v16, 0.0 }
 0x130   : > { %v1531_v21 = vpop.f32.mrf.mxu0  ;;  %v1579_v22 = vpop.f32.mrf.mxu1 }
 0x131   : > { %v922_v23 = vadd.f32 %v1530_v19, %v2106_v53  ;;  %v938_v24 = vadd.f32 %v1578_v20, %v2106_v53 }
 0x132   : > { %v1532_v27 = vpop.f32.mrf.mxu0  ;;  %v1580_v28 = vpop.f32.mrf.mxu1 }
 0x133   : > { %v954_v29 = vmax.f32 %v922_v23, 0.0  ;;  %v970_v30 = vmax.f32 %v938_v24, 0.0  ;;  %v1533_v31 = vadd.f32 %v1532_v27, %v1531_v21  ;;  %v1581_v32 = vadd.f32 %v1580_v28, %v1579_v22 }
 0x134   : > { %v1534_v33 = vpop.f32.mrf.mxu0  ;;  %v1582_v34 = vpop.f32.mrf.mxu1 }
 0x135   : > { %v1416_v35 = vpack.c.bf16 %v954_v29, %v953_v25  ;;  %v1456_v36 = vpack.c.bf16 %v970_v30, %v969_v26  ;;  %v923_v37 = vadd.f32 %v1533_v31, %v2106_v53  ;;  %v939_v38 = vadd.f32 %v1581_v32, %v2106_v53 }
 0x136   : > { %v1535_v39 = vpop.f32.mrf.mxu0  ;;  %v1583_v40 = vpop.f32.mrf.mxu1 }
 0x137   : > { %1488 = vst [vmem:[%s2115_s29 + $0x8] sm:$0xff] %v1416_v35   ;;  %1496 = vst [vmem:[%s2115_s29 + $0x48] sm:$0xff] %v1456_v36   ;;  %v1536_v41 = vadd.f32 %v1535_v39, %v1534_v33  ;;  %v1584_v42 = vadd.f32 %v1583_v40, %v1582_v34  ;;  %v955_v47 = vmax.f32 %v923_v37, 0.0  ;;  %v971_v48 = vmax.f32 %v939_v38, 0.0 }
 0x138   : > { %v1537_v43 = vpop.f32.mrf.mxu0  ;;  %v1585_v44 = vpop.f32.mrf.mxu1 }
 0x139   : > { %v924_v45 = vadd.f32 %v1536_v41, %v2106_v53  ;;  %v940_v46 = vadd.f32 %v1584_v42, %v2106_v53 }
 0x13a   : > { %v1538_v49 = vpop.f32.mrf.mxu0  ;;  %v1586_v50 = vpop.f32.mrf.mxu1 }
 0x13b   : > { %v956_v51 = vmax.f32 %v924_v45, 0.0  ;;  %v972_v52 = vmax.f32 %v940_v46, 0.0  ;;  %v1539_v54 = vadd.f32 %v1538_v49, %v1537_v43  ;;  %v1587_v55 = vadd.f32 %v1586_v50, %v1585_v44 }
 0x13c   : > { %v1540_v56 = vpop.f32.mrf.mxu0  ;;  %v1588_v57 = vpop.f32.mrf.mxu1 }
 0x13d   : > { %v1421_v58 = vpack.c.bf16 %v956_v51, %v955_v47  ;;  %v1461_v59 = vpack.c.bf16 %v972_v52, %v971_v48  ;;  %v925_v60 = vadd.f32 %v1539_v54, %v2106_v53  ;;  %v941_v61 = vadd.f32 %v1587_v55, %v2106_v53 }
 0x13e   : > { %v1541_v62 = vpop.f32.mrf.mxu0  ;;  %v1589_v63 = vpop.f32.mrf.mxu1 }
 0x13f   : > { %1489 = vst [vmem:[%s2115_s29 + $0x10] sm:$0xff] %v1421_v58   ;;  %1497 = vst [vmem:[%s2115_s29 + $0x50] sm:$0xff] %v1461_v59   ;;  %v1542_v0 = vadd.f32 %v1541_v62, %v1540_v56  ;;  %v1590_v1 = vadd.f32 %v1589_v63, %v1588_v57  ;;  %v957_v6 = vmax.f32 %v925_v60, 0.0  ;;  %v973_v7 = vmax.f32 %v941_v61, 0.0 }
 0x140   : > { %v1543_v2 = vpop.f32.mrf.mxu0  ;;  %v1591_v3 = vpop.f32.mrf.mxu1 }
 0x141   : > { %v926_v4 = vadd.f32 %v1542_v0, %v2106_v53  ;;  %v942_v5 = vadd.f32 %v1590_v1, %v2106_v53 }
 0x142   : > { %v1544_v8 = vpop.f32.mrf.mxu0  ;;  %v1592_v9 = vpop.f32.mrf.mxu1 }
 0x143   : > { %v958_v10 = vmax.f32 %v926_v4, 0.0  ;;  %v974_v11 = vmax.f32 %v942_v5, 0.0  ;;  %v1545_v12 = vadd.f32 %v1544_v8, %v1543_v2  ;;  %v1593_v13 = vadd.f32 %v1592_v9, %v1591_v3 }
 0x144   : > { %v1546_v14 = vpop.f32.mrf.mxu0  ;;  %v1594_v15 = vpop.f32.mrf.mxu1 }
 0x145   : > { %v1426_v16 = vpack.c.bf16 %v958_v10, %v957_v6  ;;  %v1466_v17 = vpack.c.bf16 %v974_v11, %v973_v7  ;;  %v927_v18 = vadd.f32 %v1545_v12, %v2106_v53  ;;  %v943_v19 = vadd.f32 %v1593_v13, %v2106_v53 }
 0x146   : > { %v1547_v20 = vpop.f32.mrf.mxu0  ;;  %v1595_v21 = vpop.f32.mrf.mxu1 }
 0x147   : > { %1490 = vst [vmem:[%s2115_s29 + $0x18] sm:$0xff] %v1426_v16   ;;  %1498 = vst [vmem:[%s2115_s29 + $0x58] sm:$0xff] %v1466_v17   ;;  %v1548_v22 = vadd.f32 %v1547_v20, %v1546_v14  ;;  %v1596_v23 = vadd.f32 %v1595_v21, %v1594_v15  ;;  %v959_v28 = vmax.f32 %v927_v18, 0.0  ;;  %v975_v29 = vmax.f32 %v943_v19, 0.0 }
 0x148   : > { %v1549_v24 = vpop.f32.mrf.mxu0  ;;  %v1597_v25 = vpop.f32.mrf.mxu1 }
 0x149   : > { %v928_v26 = vadd.f32 %v1548_v22, %v2106_v53  ;;  %v944_v27 = vadd.f32 %v1596_v23, %v2106_v53 }
 0x14a   : > { %v1550_v30 = vpop.f32.mrf.mxu0  ;;  %v1598_v31 = vpop.f32.mrf.mxu1 }
 0x14b   : > { %v960_v32 = vmax.f32 %v928_v26, 0.0  ;;  %v976_v33 = vmax.f32 %v944_v27, 0.0  ;;  %v1551_v34 = vadd.f32 %v1550_v30, %v1549_v24  ;;  %v1599_v35 = vadd.f32 %v1598_v31, %v1597_v25 }
 0x14c   : > { %v1552_v36 = vpop.f32.mrf.mxu0  ;;  %v1600_v37 = vpop.f32.mrf.mxu1 }
 0x14d   : > { %v1431_v38 = vpack.c.bf16 %v960_v32, %v959_v28  ;;  %v1471_v39 = vpack.c.bf16 %v976_v33, %v975_v29  ;;  %v929_v40 = vadd.f32 %v1551_v34, %v2106_v53  ;;  %v945_v41 = vadd.f32 %v1599_v35, %v2106_v53 }
 0x14e   : > { %v1553_v42 = vpop.f32.mrf.mxu0  ;;  %v1601_v43 = vpop.f32.mrf.mxu1 }
 0x14f   : > { %1491 = vst [vmem:[%s2115_s29 + $0x20] sm:$0xff] %v1431_v38   ;;  %1499 = vst [vmem:[%s2115_s29 + $0x60] sm:$0xff] %v1471_v39   ;;  %v1554_v44 = vadd.f32 %v1553_v42, %v1552_v36  ;;  %v1602_v45 = vadd.f32 %v1601_v43, %v1600_v37  ;;  %v961_v50 = vmax.f32 %v929_v40, 0.0  ;;  %v977_v51 = vmax.f32 %v945_v41, 0.0 }
 0x150   : > { %v1555_v46 = vpop.f32.mrf.mxu0  ;;  %v1603_v47 = vpop.f32.mrf.mxu1 }
 0x151   : > { %v930_v48 = vadd.f32 %v1554_v44, %v2106_v53  ;;  %v946_v49 = vadd.f32 %v1602_v45, %v2106_v53 }
 0x152   : > { %v1556_v52 = vpop.f32.mrf.mxu0  ;;  %v1604_v54 = vpop.f32.mrf.mxu1 }
 0x153   : > { %v962_v55 = vmax.f32 %v930_v48, 0.0  ;;  %v978_v56 = vmax.f32 %v946_v49, 0.0  ;;  %v1557_v57 = vadd.f32 %v1556_v52, %v1555_v46  ;;  %v1605_v58 = vadd.f32 %v1604_v54, %v1603_v47 }
 0x154   : > { %v1558_v59 = vpop.f32.mrf.mxu0  ;;  %v1606_v60 = vpop.f32.mrf.mxu1 }
 0x155   : > { %v1436_v61 = vpack.c.bf16 %v962_v55, %v961_v50  ;;  %v1476_v62 = vpack.c.bf16 %v978_v56, %v977_v51  ;;  %v931_v63 = vadd.f32 %v1557_v57, %v2106_v53  ;;  %v947_v0 = vadd.f32 %v1605_v58, %v2106_v53 }
 0x156   : > { %v1559_v1 = vpop.f32.mrf.mxu0  ;;  %v1607_v2 = vpop.f32.mrf.mxu1 }
 0x157   : > { %1492 = vst [vmem:[%s2115_s29 + $0x28] sm:$0xff] %v1436_v61   ;;  %1500 = vst [vmem:[%s2115_s29 + $0x68] sm:$0xff] %v1476_v62   ;;  %v1560_v3 = vadd.f32 %v1559_v1, %v1558_v59  ;;  %v1608_v4 = vadd.f32 %v1607_v2, %v1606_v60  ;;  %v963_v9 = vmax.f32 %v931_v63, 0.0  ;;  %v979_v10 = vmax.f32 %v947_v0, 0.0 }
 0x158   : > { %v1561_v5 = vpop.f32.mrf.mxu0  ;;  %v1609_v6 = vpop.f32.mrf.mxu1 }
 0x159   : > { %v932_v7 = vadd.f32 %v1560_v3, %v2106_v53  ;;  %v948_v8 = vadd.f32 %v1608_v4, %v2106_v53 }
 0x15a   : > { %v1562_v11 = vpop.f32.mrf.mxu0  ;;  %v1610_v12 = vpop.f32.mrf.mxu1 }
 0x15b   : > { %v964_v13 = vmax.f32 %v932_v7, 0.0  ;;  %v980_v14 = vmax.f32 %v948_v8, 0.0  ;;  %v1563_v15 = vadd.f32 %v1562_v11, %v1561_v5  ;;  %v1611_v16 = vadd.f32 %v1610_v12, %v1609_v6 }
 0x15c   : > { %v1564_v17 = vpop.f32.mrf.mxu0  ;;  %v1612_v18 = vpop.f32.mrf.mxu1 }
 0x15d   : > { %v1441_v19 = vpack.c.bf16 %v964_v13, %v963_v9  ;;  %v1481_v20 = vpack.c.bf16 %v980_v14, %v979_v10  ;;  %v933_v23 = vadd.f32 %v1563_v15, %v2106_v53  ;;  %v949_v24 = vadd.f32 %v1611_v16, %v2106_v53 }
 0x15e   : > { %v1565_v21 = vpop.f32.mrf.mxu0  ;;  %v1613_v22 = vpop.f32.mrf.mxu1 }
 0x15f   : > { %1493 = vst [vmem:[%s2115_s29 + $0x30] sm:$0xff] %v1441_v19   ;;  %1501 = vst [vmem:[%s2115_s29 + $0x70] sm:$0xff] %v1481_v20   ;;  %v1566_v25 = vadd.f32 %v1565_v21, %v1564_v17  ;;  %v1614_v26 = vadd.f32 %v1613_v22, %v1612_v18  ;;  %v965_v29 = vmax.f32 %v933_v23, 0.0  ;;  %v981_v30 = vmax.f32 %v949_v24, 0.0 }
 0x161   : > { %v934_v27 = vadd.f32 %v1566_v25, %v2106_v53  ;;  %v950_v28 = vadd.f32 %v1614_v26, %v2106_v53 }
 0x163   : > { %v966_v31 = vmax.f32 %v934_v27, 0.0  ;;  %v982_v32 = vmax.f32 %v950_v28, 0.0 }
 0x165   : > { %v1446_v33 = vpack.c.bf16 %v966_v31, %v965_v29  ;;  %v1486_v34 = vpack.c.bf16 %v982_v32, %v981_v30 }
 0x167   : > { %1494 = vst [vmem:[%s2115_s29 + $0x38] sm:$0xff] %v1446_v33   ;;  %1502 = vst [vmem:[%s2115_s29 + $0x78] sm:$0xff] %v1486_v34  }
 0x168   : > { %1841 = shalt.err (!%p1838_p3)
}
 0x169   : > { %s1842_s26 = scalar_lea.hbm %s2162_s7, 2048  ;;  %s1846_s20 = scalar_lea.hbm %s2216_s3, 16384 }
 0x16a   : > { %p1843_p5 = scmp.ne.s32.totalorder %s2162_s7, %s1842_s26  ;;  %p1847_p6 = scmp.lt.s32.totalorder %s2162_s7, %s2216_s3 }
 0x16b   : > { %p1848_p11 = scmp.lt.s32.totalorder %s1846_s20, %s1842_s26 }
 0x16c   : > { %p1844_p7 = pnand %p1843_p5, %p2227_p4 }
 0x16d   : > { %p1849_p10 = por %p1848_p11, %p1847_p6 }
 0x16e   : > { %p1845_p9 = pneg %p1844_p7 }
 0x170   : > { %p1850_p1 = pnand %p1849_p10, %p1845_p9 }
 0x172   : > { %1853 = shalt.err (!%p1850_p1)
}
 0x173   : > { %s1921_s29 = smov 64   ;;  %s1922_s4 = smov 4  }
 0x174   : > { %1637 = dma.vmem_to_hbm [thread:$0]  (%p2227_p4), %s2164_s21, 2048, %s2162_s7, %s1144_s15, %s1921_s29, %s1921_s29, %s1922_s4  }
 0x175 PF: > { %p1654_p8 = scmp.ge.s32.totalorder %s1912_s17, 2  ;;  %s1173_s5 = sand.u32 1, %s1892_s12  }
 0x176   : > { %p2228_p12 = scmp.ne.s32.totalorder %s2221_s23, 0  ;;  %s1174_s6 = scalar_lea.sflag [#allocation5], %s1173_s5 }
 0x178   : > { %p1648_p13 = pnand %p1654_p8, %p2228_p12 }
 0x17a   : > { %p1649_p0 = pneg %p1648_p13 }
 0x17c   : > { %1887 = dma.done.wait (%p1649_p0), %s1174_s6, 2048  }
 0x17d   : > { %1889 = vsyncadd (%p1649_p0), %s1174_s6, 4294965248  ;;  %s20_s17 = sadd.s32 1, %s1912_s17   ;;  %s2229_s12 = smov %s1896_s13 }
 0x17e   : > { %p17_p2 = scmp.ge.s32.totalorder %s20_s17, 10   ;;  %s2230_s13 = smov %s1900_s14 }
 0x17f   : > { %s2231_s14 = smov %s2038_s19  ;;  %s2232_s15 = smov %s1908_s16 }
 0x180   : > { %s2233_s16 = smov %s2235_s28  ;;  %19 = sbr.rel (!%p17_p2) target bundleno = 7 (0x7), region = 97 }
 0x185   :  { %1179 = vsyncpa [#allocation4], 1 }
 0x186   :  { %1181 = vsyncpa [#allocation4 + $0x1], 1 }
 0x187   :  { %1182 = vsyncpa [#allocation7], 1 }
 0x188   :  { %1183 = vsyncpa [#allocation5], 1 }
 0x189   :  { %1185 = vsyncpa [#allocation5 + $0x1], 1 }

</bundles_post_ra>
